<compile_context>
chip_gen: v5e
topology: v5e:2x2
jax: 0.10.0
libtpu: 0.0.40
codegen_flags: <defaults>
</compile_context>

<pallas_src>
import functools
import math

import jax
import jax.numpy as jnp
from jax import lax
from jax.experimental import pallas as pl
from jax.experimental.pallas import tpu as pltpu

_LANE = 128
_SUBLANE = 8
# ~4 MiB per input block per step: big enough to approach HBM roofline,
# small enough that 2 inputs x 2 pipeline buffers (~16 MiB) fit the VMEM budget
# on v5e / v6e / v7x with the explicit 32 MiB scoped limit below.
_TARGET_BLOCK_BYTES = 4 * 1024 * 1024
_VMEM_LIMIT_BYTES = 32 * 1024 * 1024


def _round_down(x: int, m: int) -> int:
    return (x // m) * m


def _entropy_kernel_rows(s_ref, g_ref, num_ref, den_ref, *, n_rows, tile_rows,
                         need_mask):
    """Sublane-dense path. Blocks: (1, tile_rows, 128); acc blocks (1, 1, 128)."""
    i = pl.program_id(1)

    @pl.when(i == 0)
    def _():
        num_ref[...] = jnp.zeros_like(num_ref)
        den_ref[...] = jnp.zeros_like(den_ref)

    s = s_ref[...].astype(jnp.float32)   # (1, tile_rows, 128)
    g = g_ref[...].astype(jnp.float32)

    if need_mask:  # static: only the ragged last row-tile needs it
        row = i * tile_rows + lax.broadcasted_iota(jnp.int32, s.shape, 1)
        valid = row < n_rows
        s = jnp.where(valid, s, 1.0)   # mask BEFORE log: log(1) == 0
        g = jnp.where(valid, g, 0.0)

    # Keep the 128-lane axis in the accumulators; only fold sublanes here.
    num_ref[...] += jnp.sum(jnp.log(s) * g, axis=1, keepdims=True)   # (1,1,128)
    den_ref[...] += jnp.sum(g, axis=1, keepdims=True)                # (1,1,128)


def _entropy_kernel_flat(s_ref, g_ref, num_ref, den_ref, *, n_cols, tile_cols,
                         need_mask):
    """Fallback path (N % 128 != 0). Blocks: (B, tile_cols); acc blocks (B, 1)."""
    i = pl.program_id(0)

    @pl.when(i == 0)
    def _():
        num_ref[...] = jnp.zeros_like(num_ref)
        den_ref[...] = jnp.zeros_like(den_ref)

    s = s_ref[...].astype(jnp.float32)   # (B, tile_cols)
    g = g_ref[...].astype(jnp.float32)

    if need_mask:
        col = i * tile_cols + lax.broadcasted_iota(jnp.int32, s.shape, 1)
        valid = col < n_cols
        s = jnp.where(valid, s, 1.0)
        g = jnp.where(valid, g, 0.0)

    num_ref[...] += jnp.sum(jnp.log(s) * g, axis=-1, keepdims=True)  # (B, 1)
    den_ref[...] += jnp.sum(g, axis=-1, keepdims=True)               # (B, 1)


def entropy_loss(sampling_scores, gt_scores):
    """Pallas TPU implementation of EntropyLoss.forward. Returns a scalar f32.

    Inputs may be f32 or bf16 (they are DMA'd in native dtype and cast to f32
    inside the kernel); do not up-cast in the caller.
    """
    assert sampling_scores.shape == gt_scores.shape
    B = sampling_scores.shape[0]
    N = int(math.prod(sampling_scores.shape[1:]))
    s_bytes = jnp.dtype(sampling_scores.dtype).itemsize
    g_bytes = jnp.dtype(gt_scores.dtype).itemsize
    itemsize = max(s_bytes, g_bytes)

    cost = pl.CostEstimate(
        flops=3 * B * N,
        transcendentals=B * N,
        bytes_accessed=B * N * (s_bytes + g_bytes) + 2 * B * _LANE * 4,
    )

    if N % _LANE == 0:
        # ---- Sublane-dense path: free reshape to (B, R, 128). ----
        R = N // _LANE
        s3 = sampling_scores.reshape(B, R, _LANE)
        g3 = gt_scores.reshape(B, R, _LANE)

        tile_target = max(
            _SUBLANE,
            _round_down(_TARGET_BLOCK_BYTES // (_LANE * itemsize), _SUBLANE))
        tile_r = R if R <= tile_target else tile_target
        grid_rows = pl.cdiv(R, tile_r)
        need_mask = (R % tile_r) != 0

        kernel = functools.partial(
            _entropy_kernel_rows, n_rows=R, tile_rows=tile_r,
            need_mask=need_mask)

        num_p, den_p = pl.pallas_call(
            kernel,
            out_shape=(jax.ShapeDtypeStruct((B, 1, _LANE), jnp.float32),
                       jax.ShapeDtypeStruct((B, 1, _LANE), jnp.float32)),
            grid_spec=pltpu.PrefetchScalarGridSpec(
                num_scalar_prefetch=0,
                grid=(B, grid_rows),
                in_specs=[
                    pl.BlockSpec((1, tile_r, _LANE), lambda b, i: (b, i, 0)),
                    pl.BlockSpec((1, tile_r, _LANE), lambda b, i: (b, i, 0)),
                ],
                out_specs=[
                    pl.BlockSpec((1, 1, _LANE), lambda b, i: (b, 0, 0)),
                    pl.BlockSpec((1, 1, _LANE), lambda b, i: (b, 0, 0)),
                ],
            ),
            compiler_params=pltpu.CompilerParams(
                dimension_semantics=("parallel", "arbitrary"),
                vmem_limit_bytes=_VMEM_LIMIT_BYTES),
            cost_estimate=cost,
        )(s3, g3)

        num = jnp.sum(num_p, axis=(1, 2))   # (B,)
        den = jnp.sum(den_p, axis=(1, 2))   # (B,)
    else:
        # ---- Ragged fallback: flat (B, N) tiling with in-kernel lane mask. ----
        s2 = sampling_scores.reshape(B, N)
        g2 = gt_scores.reshape(B, N)

        tile_target = max(
            _LANE, _round_down(_TARGET_BLOCK_BYTES // (B * itemsize), _LANE))
        tile_n = N if N <= tile_target else tile_target
        grid_cols = pl.cdiv(N, tile_n)
        need_mask = (N % tile_n) != 0

        kernel = functools.partial(
            _entropy_kernel_flat, n_cols=N, tile_cols=tile_n,
            need_mask=need_mask)

        num_p, den_p = pl.pallas_call(
            kernel,
            out_shape=(jax.ShapeDtypeStruct((B, 1), jnp.float32),
                       jax.ShapeDtypeStruct((B, 1), jnp.float32)),
            grid_spec=pltpu.PrefetchScalarGridSpec(
                num_scalar_prefetch=0,
                grid=(grid_cols,),
                in_specs=[
                    pl.BlockSpec((B, tile_n), lambda i: (0, i)),
                    pl.BlockSpec((B, tile_n), lambda i: (0, i)),
                ],
                out_specs=[
                    pl.BlockSpec((B, 1), lambda i: (0, 0)),
                    pl.BlockSpec((B, 1), lambda i: (0, 0)),
                ],
            ),
            compiler_params=pltpu.CompilerParams(
                dimension_semantics=("arbitrary",),
                vmem_limit_bytes=_VMEM_LIMIT_BYTES),
            cost_estimate=cost,
        )(s2, g2)

        num = num_p[:, 0]   # (B,)
        den = den_p[:, 0]   # (B,)

    # Tiny epilogue: per-batch divide + mean over batches.
    return jnp.mean(-num / den)


def entropy_loss_ref(sampling_scores, gt_scores):
    """Pure-JAX reference mirroring the PyTorch module."""
    num = jnp.sum(jnp.log(sampling_scores) * gt_scores, axis=(2, 1))
    den = jnp.sum(gt_scores, axis=(2, 1))
    return jnp.mean(-num / den)


if __name__ == "__main__":
    key = jax.random.PRNGKey(0)
    k1, k2, k3, k4 = jax.random.split(key, 4)

    # Main test: (B, H, W) with H*W a multiple of 128 -> sublane-dense path.
    B, H, W = 2, 16, 16
    # sampling_scores must be positive (they go through log()).
    sampling = jax.random.uniform(k1, (B, H, W), dtype=jnp.float32,
                                  minval=0.05, maxval=1.0)
    gt = jax.random.uniform(k2, (B, H, W), dtype=jnp.float32,
                            minval=0.0, maxval=1.0)
    loss = entropy_loss(sampling, gt)
    jax.block_until_ready(loss)
    ref = entropy_loss_ref(sampling, gt)
    assert jnp.allclose(loss, ref, rtol=1e-5, atol=1e-5), (loss, ref)

    # Ragged test: H*W not a multiple of 128 -> flat fallback path.
    B2, H2, W2 = 2, 4, 16
    sampling2 = jax.random.uniform(k3, (B2, H2, W2), dtype=jnp.float32,
                                   minval=0.05, maxval=1.0)
    gt2 = jax.random.uniform(k4, (B2, H2, W2), dtype=jnp.float32,
                             minval=0.0, maxval=1.0)
    loss2 = entropy_loss(sampling2, gt2)
    jax.block_until_ready(loss2)
    ref2 = entropy_loss_ref(sampling2, gt2)
    assert jnp.allclose(loss2, ref2, rtol=1e-5, atol=1e-5), (loss2, ref2)

    print("KERNEL_OK")
</pallas_src>

<mosaic_0001>
module attributes {stable_mosaic.version = 11 : i64} {
  func.func @_entropy_kernel_rows(%arg0: i32, %arg1: i32, %arg2: memref<1x2x128xf32, #tpu.memory_space<vmem>>, %arg3: memref<1x2x128xf32, #tpu.memory_space<vmem>>, %arg4: memref<1x1x128xf32, #tpu.memory_space<vmem>>, %arg5: memref<1x1x128xf32, #tpu.memory_space<vmem>>) attributes {dimension_semantics = [#tpu.dimension_semantics<parallel>, #tpu.dimension_semantics<arbitrary>], iteration_bounds = array<i64: 2, 1>, scalar_prefetch = 0 : i64, scratch_operands = 0 : i64, tpu.core_type = #tpu.core_type<tc>, window_params = [{transform_indices = @transform_0, window_bounds = array<i64: 1, 2, 128>}, {transform_indices = @transform_1, window_bounds = array<i64: 1, 2, 128>}, {transform_indices = @transform_2, window_bounds = array<i64: 1, 1, 128>}, {transform_indices = @transform_3, window_bounds = array<i64: 1, 1, 128>}]} {
    %c0_i32 = arith.constant 0 : i32
    %0 = arith.cmpi eq, %arg1, %c0_i32 : i32
    %1 = arith.extui %0 : i1 to i32
    %c0_i32_0 = arith.constant 0 : i32
    %2 = arith.cmpi ne, %1, %c0_i32_0 : i32
    scf.if %2 {
      %cst_19 = arith.constant 0.000000e+00 : f32
      %17 = vector.broadcast %cst_19 : f32 to vector<1x1x128xf32>
      %c0_20 = arith.constant 0 : index
      %c0_21 = arith.constant 0 : index
      %c0_22 = arith.constant 0 : index
      %18 = vector.load %arg4[%c0_20, %c0_21, %c0_22] : memref<1x1x128xf32, #tpu.memory_space<vmem>>, vector<1x1x128xf32>
      tpu.vector_store %arg4[%c0_20, %c0_21, %c0_22], %17 {strides = array<i32>} : memref<1x1x128xf32, #tpu.memory_space<vmem>>, vector<1x1x128xf32>,
      %cst_23 = arith.constant 0.000000e+00 : f32
      %19 = vector.broadcast %cst_23 : f32 to vector<1x1x128xf32>
      %c0_24 = arith.constant 0 : index
      %c0_25 = arith.constant 0 : index
      %c0_26 = arith.constant 0 : index
      %20 = vector.load %arg5[%c0_24, %c0_25, %c0_26] : memref<1x1x128xf32, #tpu.memory_space<vmem>>, vector<1x1x128xf32>
      tpu.vector_store %arg5[%c0_24, %c0_25, %c0_26], %19 {strides = array<i32>} : memref<1x1x128xf32, #tpu.memory_space<vmem>>, vector<1x1x128xf32>,
    } else {
    }
    %c0 = arith.constant 0 : index
    %c0_1 = arith.constant 0 : index
    %c0_2 = arith.constant 0 : index
    %3 = vector.load %arg2[%c0, %c0_1, %c0_2] : memref<1x2x128xf32, #tpu.memory_space<vmem>>, vector<1x2x128xf32>
    %c0_3 = arith.constant 0 : index
    %c0_4 = arith.constant 0 : index
    %c0_5 = arith.constant 0 : index
    %4 = vector.load %arg3[%c0_3, %c0_4, %c0_5] : memref<1x2x128xf32, #tpu.memory_space<vmem>>, vector<1x2x128xf32>
    %c0_6 = arith.constant 0 : index
    %c0_7 = arith.constant 0 : index
    %c0_8 = arith.constant 0 : index
    %5 = vector.load %arg4[%c0_6, %c0_7, %c0_8] : memref<1x1x128xf32, #tpu.memory_space<vmem>>, vector<1x1x128xf32>
    %6 = math.log %3 : vector<1x2x128xf32>
    %7 = arith.mulf %6, %4 : vector<1x2x128xf32>
    %cst = arith.constant dense<0.000000e+00> : vector<1x128xf32>
    %8 = vector.multi_reduction <add>, %7, %cst [1] : vector<1x2x128xf32> to vector<1x128xf32>
    %9 = vector.shape_cast %8 : vector<1x128xf32> to vector<1x1x128xf32>
    %10 = arith.addf %5, %9 : vector<1x1x128xf32>
    %c0_9 = arith.constant 0 : index
    %c0_10 = arith.constant 0 : index
    %c0_11 = arith.constant 0 : index
    %11 = vector.load %arg4[%c0_9, %c0_10, %c0_11] : memref<1x1x128xf32, #tpu.memory_space<vmem>>, vector<1x1x128xf32>
    tpu.vector_store %arg4[%c0_9, %c0_10, %c0_11], %10 {strides = array<i32>} : memref<1x1x128xf32, #tpu.memory_space<vmem>>, vector<1x1x128xf32>,
    %c0_12 = arith.constant 0 : index
    %c0_13 = arith.constant 0 : index
    %c0_14 = arith.constant 0 : index
    %12 = vector.load %arg5[%c0_12, %c0_13, %c0_14] : memref<1x1x128xf32, #tpu.memory_space<vmem>>, vector<1x1x128xf32>
    %cst_15 = arith.constant dense<0.000000e+00> : vector<1x128xf32>
    %13 = vector.multi_reduction <add>, %4, %cst_15 [1] : vector<1x2x128xf32> to vector<1x128xf32>
    %14 = vector.shape_cast %13 : vector<1x128xf32> to vector<1x1x128xf32>
    %15 = arith.addf %12, %14 : vector<1x1x128xf32>
    %c0_16 = arith.constant 0 : index
    %c0_17 = arith.constant 0 : index
    %c0_18 = arith.constant 0 : index
    %16 = vector.load %arg5[%c0_16, %c0_17, %c0_18] : memref<1x1x128xf32, #tpu.memory_space<vmem>>, vector<1x1x128xf32>
    tpu.vector_store %arg5[%c0_16, %c0_17, %c0_18], %15 {strides = array<i32>} : memref<1x1x128xf32, #tpu.memory_space<vmem>>, vector<1x1x128xf32>,
    return
  }
  func.func @transform_0(%arg0: i32, %arg1: i32) -> (i32, i32, i32) {
    %c0_i32 = arith.constant 0 : i32
    %c0_i32_0 = arith.constant 0 : i32
    return %arg0, %arg1, %c0_i32 : i32, i32, i32
  }
  func.func @transform_1(%arg0: i32, %arg1: i32) -> (i32, i32, i32) {
    %c0_i32 = arith.constant 0 : i32
    %c0_i32_0 = arith.constant 0 : i32
    return %arg0, %arg1, %c0_i32 : i32, i32, i32
  }
  func.func @transform_2(%arg0: i32, %arg1: i32) -> (i32, i32, i32) {
    %c0_i32 = arith.constant 0 : i32
    %c0_i32_0 = arith.constant 0 : i32
    %c0_i32_1 = arith.constant 0 : i32
    return %arg0, %c0_i32, %c0_i32_0 : i32, i32, i32
  }
  func.func @transform_3(%arg0: i32, %arg1: i32) -> (i32, i32, i32) {
    %c0_i32 = arith.constant 0 : i32
    %c0_i32_0 = arith.constant 0 : i32
    %c0_i32_1 = arith.constant 0 : i32
    return %arg0, %c0_i32, %c0_i32_0 : i32, i32, i32
  }
}

</mosaic_0001>

<bundles_post_ra>
// kernel: tpu_custom_call.1
= control target key start
LH: loop header
LB: loop body
LE: loop exit
PB: predicated region body
PF: predicated region fallthrough
CT: control target
= control target key end

     0   :  { %9 = vsyncpa [#allocation3], 0  ;;  %s885_s0 = inlined_call_operand.hbm [shape: f32[2,2,128], index: 0, kind: input, shape index: {}]   ;;  %s886_s1 = inlined_call_operand.hbm [shape: f32[2,2,128], index: 1, kind: input, shape index: {}]   ;;  %s887_s2 = inlined_call_operand.hbm [shape: f32[2,1,128], index: 2, kind: output, shape index: {0}]   ;;  %s888_s3 = inlined_call_operand.hbm [shape: f32[2,1,128], index: 3, kind: output, shape index: {1}]  }
   0x1   :  { %11 = vsyncpa [#allocation3 + $0x1], 0 }
   0x2   :  { %12 = vsyncpa [#allocation6], 0 }
   0x3   :  { %14 = vsyncpa [#allocation6 + $0x1], 0 }
   0x4   :  { %15 = vsyncpa [#allocation4], 0 }
   0x5   :  { %17 = vsyncpa [#allocation4 + $0x1], 0 }
   0x6   :  { %18 = vsyncpa [#allocation9], 0 }
   0x7   :  { %20 = vsyncpa [#allocation9 + $0x1], 0  ;;  %s732_s12 = smov 0   ;;  %s734_s13 = smov 0  }
   0x8   :  { %s736_s14 = smov 0   ;;  %s738_s15 = smov 0  }
   0x9   :  { %s740_s16 = smov 0   ;;  %s742_s17 = smov 0  }
   0xa LB: > { %s443_s18 = sadd.s32 4294967295, %s709_s17   ;;  %s444_s19 = sadd.s32 4294967294, %s709_s17   ;;  %s709_s17 = sphi %s742_s17, %s26_s17   ;;  %s705_s16 = sphi %s740_s16, %s897_s16   ;;  %s701_s15 = sphi %s738_s15, %s896_s15   ;;  %s697_s14 = sphi %s736_s14, %s895_s14   ;;  %s693_s13 = sphi %s734_s13, %s894_s13   ;;  %s689_s12 = sphi %s732_s12, %s893_s12  }
   0xb   : > { %s38_s20 = sadd.s32 1, %s705_s16  ;;  %s47_s21 = sadd.s32 1, %s697_s14 }
   0xc   : > { %p40_p0 = scmp.ge.s32.totalorder %s38_s20, 2  ;;  %p54_p1 = scmp.ne.s32.totalorder %s697_s14, %s693_s13 }
   0xd   : > { %p55_p2 = scmp.eq.s32.totalorder %s709_s17, 0  ;;  %p60_p3 = scmp.ne.s32.totalorder %s693_s13, %s689_s12 }
   0xe   : > { %s899_s20 = smov (%p40_p0, %s38_s20), 0  ;;  %p61_p5 = scmp.eq.s32.totalorder %s443_s18, 0 }
   0xf   : > { %p773_p4 = por %p55_p2, %p54_p1  ;;  %s42_s23 = ssub.s32 %s705_s16, %s899_s20 }
  0x10   : > { %p112_p6 = scmp.eq.s32.totalorder %s443_s18, 1  ;;  %p45_p7 = scmp.eq.s32.totalorder %s42_s23, 0 }
  0x11   : > { %p779_p8 = por %p61_p5, %p60_p3  ;;  %p118_p10 = scmp.eq.s32.totalorder %s444_s19, 1 }
  0x12   : > { %p783_p9 = por %p112_p6, %p54_p1  ;;  %p446_p12 = scmp.ge.s32.totalorder %s709_s17, 2 }
  0x13   : > { %s788_s26 = scalar_select %p45_p7, %s697_s14, %s47_s21  }
  0x14   : > { %p790_p11 = por %p118_p10, %p60_p3  ;;  %p478_p13 = scmp.lt.s32.totalorder %s709_s17, 2 }
  0x15   : > { %s164_s28 = sand.u32 1, %s697_s14   ;;  %s448_s30 = sshll.u32 %s705_s16, 1 }
  0x16   : > { %s447_s29 = sshll.u32 %s164_s28, 1  ;;  %s173_s6 = scalar_lea.hbm %s885_s0, %s448_s30 }
  0x17   : > { %s168_s7 = scalar_lea.vmem [#allocation2], %s447_s29  ;;  %s175_s9 = sshll.u32 %s173_s6, 4  ;;  %s176_s9 = int_to_ptr.hbm [resolvable:$true] %s175_s9 }
  0x18   : > { %s177_s8 = sshll.u32 %s168_s7, 4  ;;  %p465_p0 = pnand %p478_p13, %p773_p4  ;;  %s178_s8 = int_to_ptr.vmem [resolvable:$true] %s177_s8 }
  0x19   : > { %p451_p1 = scmp.ge.s32.totalorder %s709_s17, 1  ;;  %p202_p2 = scmp.lt.s32.totalorder %s709_s17, 3 }
  0x1a   : > { %s165_s10 = scalar_lea.sflag [#allocation3], %s164_s28  ;;  %s193_s19 = scalar_lea.hbm %s886_s1, %s448_s30 }
  0x1b   : > { %467 = dma.hbm_to_vmem [thread:$0]  (!%p465_p0), %s176_s9, 32, %s178_s8, %s165_s10  }
  0x1c   : > { %p203_p3 = pnand %p451_p1, %p202_p2  ;;  %s188_s21 = scalar_lea.vmem [#allocation5], %s447_s29 }
  0x1d   : > { %s197_s23 = sshll.u32 %s188_s21, 4  ;;  %s195_s4 = sshll.u32 %s193_s19, 4  ;;  %s198_s23 = int_to_ptr.vmem [resolvable:$true] %s197_s23  ;;  %s196_s4 = int_to_ptr.hbm [resolvable:$true] %s195_s4 }
  0x1e   : > { %s185_s5 = scalar_lea.sflag [#allocation6], %s164_s28  ;;  %206 = sbr.rel (%p203_p3) target bundleno = 73 (0x49), region = 28 }
  0x1f   : > { %470 = dma.hbm_to_vmem [thread:$0]  (!%p465_p0), %s196_s4, 32, %s198_s23, %s185_s5  }
  0x20   : > { %s809_s22 = sand.u32 (!%p203_p3), 1, %s693_s13  }
  0x21   : > { %s452_s6 = sshll.u32 (!%p203_p3), %s809_s22, 1  ;;  %s209_s7 = scalar_lea.sflag (!%p203_p3), [#allocation3], %s809_s22 }
  0x22   : > { %s212_s8 = scalar_lea.vmem (!%p203_p3), [#allocation2], %s452_s6 }
  0x23   : > { %672 = dma.done.wait (%p779_p8), %s209_s7, 32  }
  0x24   : > { %674 = vsyncadd (%p779_p8), %s209_s7, 4294967264  ;;  %s219_s29 = scalar_lea.sflag [#allocation6], %s809_s22  ;;  %s222_s28 = scalar_lea.vmem [#allocation5], %s452_s6 }
  0x25   : > { %676 = dma.done.wait (%p779_p8), %s219_s29, 32  }
  0x26   : > { %678 = vsyncadd (%p779_p8), %s219_s29, 4294967264  ;;  %s823_s30 = scalar_lea.vmem [#allocation7], %s809_s22  ;;  %v711_v0 = vmov 0.0   ;;  %s253_s9 = scalar_lea.vmem [#allocation8], %s809_s22  ;;  %vm266_vm0 = vcmask 1041408  }
  0x27   : > { %258 = vst [vmem:[%s823_s30] sm:$0x1] %v711_v0  ;;  %v260_v1 = vld [vmem:[%s212_s8] sm:$0x3]  ;;  %v261_v2 = vld [vmem:[%s222_s28] sm:$0x3]  ;;  %s312_s11 = scalar_lea.hbm %s888_s3, %s701_s15  ;;  %s314_s18 = sshll.u32 %s253_s9, 4  ;;  %s315_s18 = int_to_ptr.vmem [resolvable:$true] %s314_s18 }
  0x28   : > { %259 = vst [vmem:[%s253_s9] sm:$0x1] %v711_v0  ;;  %529 = vlog2.f32 %v260_v1  ;;  %v277_v3 = vsel %vm266_vm0, %v261_v2, 0.0  ;;  %s316_s19 = sshll.u32 %s312_s11, 4  ;;  %s291_s21 = scalar_lea.sflag [#allocation9], %s809_s22  ;;  %s317_s19 = int_to_ptr.hbm [resolvable:$true] %s316_s19 }
  0x29   : > { %v278_v4 = vrot.slane %v277_v3, 4  ;;  %s605_s23 = sshra.s32 %s317_s19, 4  ;;  %s611_s7 = scalar_lea.hbm %s888_s3, 2  ;;  %s606_s23 = int_to_ptr.hbm [resolvable:$true] %s605_s23 }
  0x2a   : > { %s607_s4 = scalar_lea.hbm %s606_s23, 1  ;;  %p612_p7 = scmp.lt.s32.totalorder %s606_s23, %s888_s3 }
  0x2b   : > { %v279_v5 = vadd.f32 %v278_v4, %v277_v3  ;;  %p608_p4 = scmp.ne.s32.totalorder %s606_s23, %s607_s4  ;;  %p613_p8 = scmp.lt.s32.totalorder %s611_s7, %s607_s4 }
  0x2d   : > { %v280_v6 = vrot.slane %v279_v5, 2  ;;  %p609_p5 = pnand %p608_p4, %p783_p9  ;;  %p614_p10 = por %p613_p8, %p612_p7 }
  0x2e   : > { %v530_v7 = vpop.eup %529 }
  0x2f   : > { %v264_v8 = vmul.f32 0.6931472, %v530_v7  ;;  %v281_v9 = vadd.f32 %v280_v6, %v279_v5  ;;  %v276_v12 = vld [vmem:[%s253_s9] sm:$0x1]  ;;  %p610_p6 = pneg %p609_p5 }
  0x31   : > { %v265_v10 = vmul.f32 %v264_v8, %v261_v2  ;;  %v282_v11 = vrot.slane %v281_v9, 1  ;;  %p615_p13 = pnand %p614_p10, %p610_p6 }
  0x33   : > { %v267_v13 = vsel %vm266_vm0, %v265_v10, 0.0  ;;  %v283_v14 = vadd.f32 %v282_v11, %v281_v9 }
  0x34   : > { %v268_v15 = vrot.slane %v267_v13, 4 }
  0x35   : > { %v284_v16 = vadd.f32 %v283_v14, %v276_v12 }
  0x36   : > { %v269_v17 = vadd.f32 %v268_v15, %v267_v13 }
  0x37   : > { %285 = vst [vmem:[%s253_s9] sm:$0x1] %v284_v16 }
  0x38   : > { %v270_v18 = vrot.slane %v269_v17, 2 }
  0x39   : > { %618 = shalt.err (!%p615_p13)
}
  0x3a   : > { %461 = dma.vmem_to_hbm [thread:$0]  (%p783_p9), %s315_s18, 16, %s317_s19, %s291_s21   ;;  %v271_v19 = vadd.f32 %v270_v18, %v269_v17  ;;  %v262_v21 = vld [vmem:[%s823_s30] sm:$0x1] }
  0x3b   : > { %s299_s24 = scalar_lea.hbm %s887_s2, %s701_s15  ;;  %s301_s10 = sshll.u32 %s823_s30, 4  ;;  %s302_s10 = int_to_ptr.vmem [resolvable:$true] %s301_s10 }
  0x3c   : > { %v272_v20 = vrot.slane %v271_v19, 1  ;;  %s303_s11 = sshll.u32 %s299_s24, 4  ;;  %s287_s23 = scalar_lea.sflag [#allocation4], %s809_s22  ;;  %s304_s11 = int_to_ptr.hbm [resolvable:$true] %s303_s11 }
  0x3d   : > { %s633_s4 = sshra.s32 %s304_s11, 4  ;;  %s639_s15 = scalar_lea.hbm %s887_s2, 2  ;;  %s634_s4 = int_to_ptr.hbm [resolvable:$true] %s633_s4 }
  0x3e   : > { %v273_v22 = vadd.f32 %v272_v20, %v271_v19  ;;  %s635_s5 = scalar_lea.hbm %s634_s4, 1  ;;  %p640_p3 = scmp.lt.s32.totalorder %s634_s4, %s887_s2 }
  0x3f   : > { %p636_p0 = scmp.ne.s32.totalorder %s634_s4, %s635_s5  ;;  %p641_p4 = scmp.lt.s32.totalorder %s639_s15, %s635_s5 }
  0x40   : > { %v274_v23 = vadd.f32 %v273_v22, %v262_v21 }
  0x41   : > { %p637_p1 = pnand %p636_p0, %p783_p9  ;;  %p642_p5 = por %p641_p4, %p640_p3 }
  0x42   : > { %275 = vst [vmem:[%s823_s30] sm:$0x1] %v274_v23 }
  0x43   : > { %p638_p2 = pneg %p637_p1 }
  0x45   : > { %p643_p6 = pnand %p642_p5, %p638_p2 }
  0x47   : > { %646 = shalt.err (!%p643_p6)
}
  0x48   : > { %460 = dma.vmem_to_hbm [thread:$0]  (%p783_p9), %s302_s10, 16, %s304_s11, %s287_s23  }
  0x49 PF: > { %s328_s22 = sand.u32 1, %s689_s12   ;;  %p472_p7 = pnand %p446_p12, %p790_p11 }
  0x4a   : > { %s329_s30 = scalar_lea.sflag [#allocation4], %s328_s22 }
  0x4b   : > { %p473_p8 = pneg %p472_p7 }
  0x4d   : > { %680 = dma.done.wait (%p473_p8), %s329_s30, 16  }
  0x4e   : > { %682 = vsyncadd (%p473_p8), %s329_s30, 4294967280  ;;  %s338_s7 = scalar_lea.sflag [#allocation9], %s328_s22 }
  0x4f   : > { %684 = dma.done.wait (%p473_p8), %s338_s7, 16  }
  0x50   : > { %686 = vsyncadd (%p473_p8), %s338_s7, 4294967280  ;;  %s26_s17 = sadd.s32 1, %s709_s17   ;;  %s893_s12 = smov %s693_s13 }
  0x51   : > { %p23_p10 = scmp.ge.s32.totalorder %s26_s17, 4   ;;  %s894_s13 = smov %s697_s14 }
  0x52   : > { %s895_s14 = smov %s788_s26  ;;  %s896_s15 = smov %s705_s16 }
  0x53   : > { %s897_s16 = smov %s899_s20  ;;  %25 = sbr.rel (!%p23_p10) target bundleno = 10 (0xa), region = 107 }
  0x58   :  { %343 = vsyncpa [#allocation3], 1 }
  0x59   :  { %345 = vsyncpa [#allocation3 + $0x1], 1 }
  0x5a   :  { %346 = vsyncpa [#allocation6], 1 }
  0x5b   :  { %348 = vsyncpa [#allocation6 + $0x1], 1 }
  0x5c   :  { %349 = vsyncpa [#allocation4], 1 }
  0x5d   :  { %351 = vsyncpa [#allocation4 + $0x1], 1 }
  0x5e   :  { %352 = vsyncpa [#allocation9], 1 }
  0x5f   :  { %354 = vsyncpa [#allocation9 + $0x1], 1 }

</bundles_post_ra>
